<compile_context>
chip_gen: v6e
topology: v6e:2x2x1
jax: 0.10.0
libtpu: 0.0.40
codegen_flags: <defaults>
</compile_context>

<pallas_src>
import functools

import jax
import jax.numpy as jnp
from jax.experimental import pallas as pl
from jax.experimental.pallas import tpu as pltpu

_LANE = 128     # vreg lane width
_SUBLANE = 8    # f32 vreg sublane count


def _round_up(x, m):
    return ((x + m - 1) // m) * m


def _policy_kernel(x_ref, w1_ref, b1_ref, w2_ref, b2_ref, o_ref, *, approx_recip):
    # fc1 + ReLU.  MXU matmul with f32 accumulation (inputs may be bf16 or f32);
    # bias add / ReLU / softmax all stay in f32 (v5e's VPU has no bf16).
    x = x_ref[...]
    h = jnp.dot(x, w1_ref[...], preferred_element_type=jnp.float32) + b1_ref[...]
    h = jnp.maximum(h, 0.0)

    # fc2.  K=32 is tiny, so promote the (possibly bf16) weights to f32 instead of
    # down-casting h; at production widths cast h to the weight dtype instead.
    logits = jnp.dot(h, w2_ref[...].astype(jnp.float32),
                     preferred_element_type=jnp.float32) + b2_ref[...]

    # Numerically stable softmax along the action axis.
    m = jnp.max(logits, axis=-1, keepdims=True)
    e = jnp.exp(logits - m)
    denom = jnp.sum(e, axis=-1, keepdims=True)
    # approx_recip=True lowers to the EUP vrcp slot (essentially free); the default
    # exact form preserves 1e-5 agreement with the reference.
    o_ref[...] = (e * pl.reciprocal(denom, approx=approx_recip)).astype(o_ref.dtype)


@functools.partial(jax.jit, static_argnames=("block_b", "approx_recip"))
def trpo_policy_forward(state, w1, b1, w2, b2, *, block_b=1024, approx_recip=False):
    """state: (B, S); w1: (S, H); b1: (1, H); w2: (H, A); b2: (1, A) -> (B, A) f32."""
    B, S = state.shape
    H = w1.shape[1]
    A = w2.shape[1]

    # ---- Batch tiling ------------------------------------------------------------
    # Clamp the requested tile to a sublane multiple, pick the number of grid steps,
    # keep the step count even when > 1 (v7x: both TensorCores), then derive a tile
    # that divides the padded batch evenly so padding stays < 8 rows per step.
    block_b = max(_SUBLANE, (block_b // _SUBLANE) * _SUBLANE)
    n_steps = int(pl.cdiv(B, block_b))
    if n_steps > 1 and n_steps % 2 == 1:
        n_steps += 1
    TB = _round_up(-(-B // n_steps), _SUBLANE)
    Bp = TB * n_steps
    if Bp != B:
        state = jnp.pad(state, ((0, Bp - B), (0, 0)))

    # ---- VMEM budget & cost estimate ----------------------------------------------
    itemsize_x = state.dtype.itemsize
    itemsize_w = w1.dtype.itemsize
    block_in_bytes = TB * S * itemsize_x
    block_out_bytes = TB * A * 4
    weight_bytes = (S * H + H * A) * itemsize_w + (H + A) * 4
    # double-buffered input/output blocks + resident weights + f32 temporaries (h,
    # logits/exp) + compiler scratch headroom; clamp into a safe range for all gens.
    vmem_bytes = (2 * (block_in_bytes + block_out_bytes) + weight_bytes
                  + 2 * TB * (H + A) * 4 + (4 << 20))
    vmem_bytes = int(min(max(vmem_bytes, 16 << 20), 48 << 20))

    cost = pl.CostEstimate(
        flops=2 * Bp * (S * H + H * A),
        transcendentals=Bp * A,
        bytes_accessed=(Bp * S * itemsize_x + weight_bytes + Bp * A * 4),
    )

    kernel = functools.partial(_policy_kernel, approx_recip=approx_recip)

    out = pl.pallas_call(
        kernel,
        out_shape=jax.ShapeDtypeStruct((Bp, A), jnp.float32),
        grid=(n_steps,),
        in_specs=[
            # Batch-tiled activations.
            pl.BlockSpec((TB, S), lambda i: (i, 0)),
            # Weights / biases: constant index_map -> DMA'd once, resident across steps.
            pl.BlockSpec((S, H), lambda i: (0, 0)),
            pl.BlockSpec((1, H), lambda i: (0, 0)),
            pl.BlockSpec((H, A), lambda i: (0, 0)),
            pl.BlockSpec((1, A), lambda i: (0, 0)),
        ],
        # Compact (TB, A) output block: last dim equals the full array dim, so the
        # (8,128) divisibility rule is satisfied; writeback bytes drop 16x vs the old
        # 128-lane padded output and no action-dim slice pass is needed afterwards.
        out_specs=pl.BlockSpec((TB, A), lambda i: (i, 0)),
        compiler_params=pltpu.CompilerParams(
            dimension_semantics=("parallel",),
            vmem_limit_bytes=vmem_bytes,
        ),
        cost_estimate=cost,
    )(state, w1, b1, w2, b2)

    # Only the padded batch rows (if any) are stripped; usually a no-op.
    return out if Bp == B else out[:B]


def init_params(key, state_size, action_size, hidden_dim):
    """Deterministic init mimicking nn.Linear default (uniform +-1/sqrt(fan_in))."""
    k1, k2, k3, k4 = jax.random.split(key, 4)
    bound1 = 1.0 / (state_size ** 0.5)
    bound2 = 1.0 / (hidden_dim ** 0.5)
    # Stored already transposed: (in, out) — forward uses x @ W, same math as x @ W^T
    # with PyTorch's (out, in) storage.
    w1 = jax.random.uniform(k1, (state_size, hidden_dim), jnp.float32, -bound1, bound1)
    b1 = jax.random.uniform(k2, (1, hidden_dim), jnp.float32, -bound1, bound1)
    w2 = jax.random.uniform(k3, (hidden_dim, action_size), jnp.float32, -bound2, bound2)
    b2 = jax.random.uniform(k4, (1, action_size), jnp.float32, -bound2, bound2)
    return w1, b1, w2, b2


def _reference(state, w1, b1, w2, b2):
    state = state.astype(jnp.float32)
    h = jnp.maximum(state @ w1.astype(jnp.float32) + b1, 0.0)
    return jax.nn.softmax(h @ w2.astype(jnp.float32) + b2, axis=1)


if __name__ == "__main__":
    state_size = 16
    hidden_dim = 32
    action_size = 8

    key = jax.random.PRNGKey(0)
    k_state, k_params, k_big = jax.random.split(key, 3)
    w1, b1, w2, b2 = init_params(k_params, state_size, action_size, hidden_dim)

    # --- Small batch, f32, exact softmax: must match the reference to 1e-5. ---
    batch = 8
    state = jax.random.normal(k_state, (batch, state_size), dtype=jnp.float32)
    probs = trpo_policy_forward(state, w1, b1, w2, b2)
    jax.block_until_ready(probs)
    assert probs.shape == (batch, action_size)
    assert jnp.allclose(probs, _reference(state, w1, b1, w2, b2), atol=1e-5), \
        "mismatch vs reference (small batch)"

    # --- Large batch: multi-step (even) grid, batch padding, weight residency. ---
    big_batch = 2500   # -> 4 grid steps of 632 rows, 28 padded rows stripped
    state_big = jax.random.normal(k_big, (big_batch, state_size), dtype=jnp.float32)
    probs_big = trpo_policy_forward(state_big, w1, b1, w2, b2)
    jax.block_until_ready(probs_big)
    assert probs_big.shape == (big_batch, action_size)
    assert jnp.allclose(probs_big, _reference(state_big, w1, b1, w2, b2), atol=1e-5), \
        "mismatch vs reference (tiled batch)"

    # --- bf16 call-boundary cast (halves HBM read traffic) + EUP approx reciprocal. ---
    probs_bf16 = trpo_policy_forward(
        state_big.astype(jnp.bfloat16),
        w1.astype(jnp.bfloat16), b1,
        w2.astype(jnp.bfloat16), b2,
        approx_recip=True,
    )
    jax.block_until_ready(probs_bf16)
    assert probs_bf16.shape == (big_batch, action_size)
    assert jnp.allclose(probs_bf16, _reference(state_big, w1, b1, w2, b2), atol=1e-2), \
        "mismatch vs reference (bf16 path)"

    print("KERNEL_OK")
</pallas_src>

<mosaic_0001>
module attributes {stable_mosaic.version = 11 : i64} {
  func.func @_policy_kernel(%arg0: i32, %arg1: memref<8x16xf32, #tpu.memory_space<vmem>>, %arg2: memref<16x32xf32, #tpu.memory_space<vmem>>, %arg3: memref<1x32xf32, #tpu.memory_space<vmem>>, %arg4: memref<32x8xf32, #tpu.memory_space<vmem>>, %arg5: memref<1x8xf32, #tpu.memory_space<vmem>>, %arg6: memref<8x8xf32, #tpu.memory_space<vmem>>) attributes {dimension_semantics = [#tpu.dimension_semantics<parallel>], iteration_bounds = array<i64: 1>, scalar_prefetch = 0 : i64, scratch_operands = 0 : i64, tpu.core_type = #tpu.core_type<tc>, window_params = [{transform_indices = @transform_0, window_bounds = array<i64: 8, 16>}, {pipeline_mode = #tpu.pipeline_mode<synchronous>, transform_indices = @transform_1, window_bounds = array<i64: 16, 32>}, {pipeline_mode = #tpu.pipeline_mode<synchronous>, transform_indices = @transform_2, window_bounds = array<i64: 1, 32>}, {pipeline_mode = #tpu.pipeline_mode<synchronous>, transform_indices = @transform_3, window_bounds = array<i64: 32, 8>}, {pipeline_mode = #tpu.pipeline_mode<synchronous>, transform_indices = @transform_4, window_bounds = array<i64: 1, 8>}, {transform_indices = @transform_5, window_bounds = array<i64: 8, 8>}]} {
    %c0 = arith.constant 0 : index
    %c0_0 = arith.constant 0 : index
    %0 = vector.load %arg1[%c0, %c0_0] : memref<8x16xf32, #tpu.memory_space<vmem>>, vector<8x16xf32>
    %c0_1 = arith.constant 0 : index
    %c0_2 = arith.constant 0 : index
    %1 = vector.load %arg2[%c0_1, %c0_2] : memref<16x32xf32, #tpu.memory_space<vmem>>, vector<16x32xf32>
    %cst = arith.constant dense<0.000000e+00> : vector<8x32xf32>
    %2 = tpu.matmul %0, %1, %cst {dimension_numbers = #tpu.dot_dimension_numbers<[1], [0], [0], [1], [0, 0, 1, 1], [], []>} : vector<8x16xf32>, vector<16x32xf32>, vector<8x32xf32> -> vector<8x32xf32>
    %c0_3 = arith.constant 0 : index
    %c0_4 = arith.constant 0 : index
    %3 = vector.load %arg3[%c0_3, %c0_4] : memref<1x32xf32, #tpu.memory_space<vmem>>, vector<1x32xf32>
    %4 = vector.broadcast %3 : vector<1x32xf32> to vector<8x32xf32>
    %5 = arith.addf %2, %4 : vector<8x32xf32>
    %cst_5 = arith.constant 0.000000e+00 : f32
    %6 = vector.broadcast %cst_5 : f32 to vector<8x32xf32>
    %7 = arith.maximumf %5, %6 : vector<8x32xf32>
    %c0_6 = arith.constant 0 : index
    %c0_7 = arith.constant 0 : index
    %8 = vector.load %arg4[%c0_6, %c0_7] : memref<32x8xf32, #tpu.memory_space<vmem>>, vector<32x8xf32>
    %cst_8 = arith.constant dense<0.000000e+00> : vector<8x8xf32>
    %9 = tpu.matmul %7, %8, %cst_8 {dimension_numbers = #tpu.dot_dimension_numbers<[1], [0], [0], [1], [0, 0, 1, 1], [], []>} : vector<8x32xf32>, vector<32x8xf32>, vector<8x8xf32> -> vector<8x8xf32>
    %c0_9 = arith.constant 0 : index
    %c0_10 = arith.constant 0 : index
    %10 = vector.load %arg5[%c0_9, %c0_10] : memref<1x8xf32, #tpu.memory_space<vmem>>, vector<1x8xf32>
    %11 = vector.broadcast %10 : vector<1x8xf32> to vector<8x8xf32>
    %12 = arith.addf %9, %11 : vector<8x8xf32>
    %cst_11 = arith.constant dense<0xFF800000> : vector<8xf32>
    %13 = vector.multi_reduction <maximumf>, %12, %cst_11 [1] : vector<8x8xf32> to vector<8xf32>
    %14 = vector.shape_cast %13 : vector<8xf32> to vector<8x1xf32>
    %15 = vector.broadcast %14 : vector<8x1xf32> to vector<8x8xf32>
    %16 = arith.subf %12, %15 : vector<8x8xf32>
    %17 = math.exp %16 : vector<8x8xf32>
    %cst_12 = arith.constant dense<0.000000e+00> : vector<8xf32>
    %18 = vector.multi_reduction <add>, %17, %cst_12 [1] : vector<8x8xf32> to vector<8xf32>
    %19 = vector.shape_cast %18 : vector<8xf32> to vector<8x1xf32>
    %20 = tpu.reciprocal %19 : vector<8x1xf32> -> vector<8x1xf32>
    %21 = vector.broadcast %20 : vector<8x1xf32> to vector<8x8xf32>
    %22 = arith.mulf %17, %21 : vector<8x8xf32>
    %c0_13 = arith.constant 0 : index
    %c0_14 = arith.constant 0 : index
    %23 = vector.load %arg6[%c0_13, %c0_14] : memref<8x8xf32, #tpu.memory_space<vmem>>, vector<8x8xf32>
    tpu.vector_store %arg6[%c0_13, %c0_14], %22 {strides = array<i32>} : memref<8x8xf32, #tpu.memory_space<vmem>>, vector<8x8xf32>,
    return
  }
  func.func @transform_0(%arg0: i32) -> (i32, i32) {
    %c0_i32 = arith.constant 0 : i32
    %c0_i32_0 = arith.constant 0 : i32
    return %arg0, %c0_i32 : i32, i32
  }
  func.func @transform_1(%arg0: i32) -> (i32, i32) {
    %c0_i32 = arith.constant 0 : i32
    %c0_i32_0 = arith.constant 0 : i32
    %c0_i32_1 = arith.constant 0 : i32
    return %c0_i32, %c0_i32_0 : i32, i32
  }
  func.func @transform_2(%arg0: i32) -> (i32, i32) {
    %c0_i32 = arith.constant 0 : i32
    %c0_i32_0 = arith.constant 0 : i32
    %c0_i32_1 = arith.constant 0 : i32
    return %c0_i32, %c0_i32_0 : i32, i32
  }
  func.func @transform_3(%arg0: i32) -> (i32, i32) {
    %c0_i32 = arith.constant 0 : i32
    %c0_i32_0 = arith.constant 0 : i32
    %c0_i32_1 = arith.constant 0 : i32
    return %c0_i32, %c0_i32_0 : i32, i32
  }
  func.func @transform_4(%arg0: i32) -> (i32, i32) {
    %c0_i32 = arith.constant 0 : i32
    %c0_i32_0 = arith.constant 0 : i32
    %c0_i32_1 = arith.constant 0 : i32
    return %c0_i32, %c0_i32_0 : i32, i32
  }
  func.func @transform_5(%arg0: i32) -> (i32, i32) {
    %c0_i32 = arith.constant 0 : i32
    %c0_i32_0 = arith.constant 0 : i32
    return %arg0, %c0_i32 : i32, i32
  }
}

</mosaic_0001>

<bundles_post_ra>
// kernel: trpo_policy_forward.1
= control target key start
LH: loop header
LB: loop body
LE: loop exit
PB: predicated region body
PF: predicated region fallthrough
CT: control target
= control target key end

     0   :  { %v277_v1 = vmov 0.0   ;;  %vm278_vm0 = vmmov 0   ;;  %s343_s0 = inlined_call_operand.vmem [shape: f32[8,16], index: 0, kind: input, shape index: {}]   ;;  %s344_s1 = inlined_call_operand.vmem [shape: f32[16,32], index: 1, kind: input, shape index: {}]   ;;  %s345_s2 = inlined_call_operand.vmem [shape: f32[1,32], index: 2, kind: input, shape index: {}]   ;;  %s346_s3 = inlined_call_operand.vmem [shape: f32[32,8], index: 3, kind: input, shape index: {}]   ;;  %s347_s4 = inlined_call_operand.vmem [shape: f32[1,8], index: 4, kind: input, shape index: {}]   ;;  %s348_s5 = inlined_call_operand.hbm [shape: f32[8,8], index: 5, kind: output, shape index: {}]  }
   0x1   :  { %v23_v0 = vld [vmem:[%s344_s1 + $0x8] sm:$0xff]  ;;  %230 = vmatprep.subr.mxu0 %v277_v1  ;;  %v22_v2 = vld [vmem:[%s344_s1] sm:$0xff]  ;;  %234 = vmatprep.mubr.msk.f32.mxu0 %vm278_vm0, %v277_v1  ;;  %v109_v3 = vld [vmem:[%s346_s3 + $0x18] sm:$0xff] }
   0x2   :  { %10 = vsyncpa [#allocation3], 0  ;;  %231 = vmatpush3.msra.mxu0 %v23_v0  ;;  %v21_v4 = vld [vmem:[%s343_s0] sm:$0xff]  ;;  %vm31_vm1 = vcmask 130048   ;;  %237 = vmatprep.subr.mxu1 %v277_v1  ;;  %v108_v5 = vld [vmem:[%s346_s3 + $0x10] sm:$0xff]  ;;  %vm117_vm2 = vcmask 261120  }
   0x3   :  { %232 = vmatprep.subr.mxu0 %v277_v1  ;;  %238 = vmatpush3.msra.mxu1 %v109_v3  ;;  %v107_v6 = vld [vmem:[%s346_s3 + $0x8] sm:$0xff]  ;;  %v106_v7 = vld [vmem:[%s346_s3] sm:$0xff]  ;;  %vm191_vm3 = vcmask 64512  }
   0x4   :  { %233 = vmatpush3.msra.mxu0 %v22_v2  ;;  %239 = vmatprep.subr.mxu1 %v277_v1  ;;  %v218_v8 = vld [vmem:[%s345_s2] ss:$0 sm:$0xff]  ;;  %s279_s2 = smov [#allocation2]  }
   0x5   :  { %235 = vmatmul.mubr.msk.f32.vlgmr.msra.gmra.mxu0 %vm31_vm1, %v21_v4  ;;  %245 = vmatprep.mubr.msk.f32.mxu1 %vm278_vm0, %v277_v1  ;;  %v220_v13 = vld [vmem:[%s347_s4] ss:$0 sm:$0xff]  ;;  %s210_s3 = sshll.u32 %s279_s2, 4  ;;  %s211_s3 = int_to_ptr.vmem [resolvable:$true] %s210_s3 }
   0x6   :  { %240 = vmatpush3.msra.mxu1 %v108_v5  ;;  %s255_s4 = scalar_lea.vmem %s211_s3, 128  ;;  %p260_p1 = scmp.lt.s32.totalorder %s211_s3, %s211_s3 }
   0x7   :  { %241 = vmatprep.subr.mxu1 %v277_v1  ;;  %p256_p0 = scmp.ne.s32.totalorder %s211_s3, %s255_s4  ;;  %p261_p2 = scmp.lt.s32.totalorder %s255_s4, %s255_s4 }
   0x8   :  { %242 = vmatpush3.msra.mxu1 %v107_v6 }
   0x9   :  { %243 = vmatprep.subr.mxu1 %v277_v1  ;;  %p262_p3 = por %p261_p2, %p260_p1 }
   0xa   :  { %244 = vmatpush3.msra.mxu1 %v106_v7 }
   0xb   :  { %p263_p4 = pnand %p262_p3, %p256_p0 }
  0xc5   :  { %v101_v9 = vpop.f32.mrf.mxu0 }
  0xc6   :  { %v102_v10 = vadd.f32 %v218_v8, %v101_v9 }
  0xc7   :  { %v236_v11 = vpop.f32.mrf.mxu0 }
  0xc8   :  { %v105_v12 = vmax.f32 %v102_v10, 0.0 }
  0xca   :  { %246 = vmatmul.mubr.msk.f32.vlgmr.msra.gmra.mxu1 %vm117_vm2, %v105_v12 }
 0x18a   :  { %v187_v14 = vpop.f32.mrf.mxu1 }
 0x18b   :  { %v188_v15 = vadd.f32 %v220_v13, %v187_v14 }
 0x18c   :  { %v247_v16 = vpop.f32.mrf.mxu1 }
 0x18d   :  { %v192_v17 = vsel %vm191_vm3, %v188_v15, -inf }
 0x18e   :  { %193 = vmax.xlane.f32.xlu0 %v192_v17 }
 0x217   :  { %v194_v18 = vpop.xlane.xlu0 %193 }
 0x218   :  { %v195_v19 = vsub.f32 %v188_v15, %v194_v18 }
 0x21a   :  { %v196_v20 = vmul.f32 1.442695, %v195_v19 }
 0x21c   :  { %251 = vpow2.f32 %v196_v20 }
 0x229   :  { %v252_v21 = vpop.eup %251 }
 0x22a   :  { %v198_v22 = vsel %vm191_vm3, %v252_v21, 0.0 }
 0x22b   :  { %199 = vadd.xlane.f32.xlu0 %v198_v22 }
 0x2b4   :  { %v200_v23 = vpop.xlane.xlu0 %199 }
 0x2b5   :  { %253 = vrcp.f32 %v200_v23 }
 0x2c2   :  { %v254_v24 = vpop.eup %253 }
 0x2c3   :  { %v202_v25 = vmul.f32 %v254_v24, %v252_v21 }
 0x2c5   :  { %203 = vst.msk [vmem:[#allocation2] sm:$0xff] %vm191_vm3, %v202_v25 }
 0x2c6   :  { %266 = shalt.err (!%p263_p4)
}
 0x2c7   :  { %213 = dma.vmem_to_hbm [thread:$0]  %s211_s3, 128, %s348_s5, [#allocation3]  }
 0x2c8   :  { %275 = dma.done.wait [#allocation3], 128  }
 0x2c9   :  { %276 = vsyncadd [#allocation3], 4294967168 }
 0x2ca   :  { %217 = vsyncpa [#allocation3], 1 }

</bundles_post_ra>
